<compile_context>
chip_gen: v7x
topology: tpu7x:2x2x1
jax: 0.10.0
libtpu: 0.0.40
codegen_flags: <defaults>
</compile_context>

<pallas_src>
import functools

import jax
import jax.numpy as jnp
import numpy as np
from jax.experimental import pallas as pl
from jax.experimental.pallas import tpu as pltpu


def _additive_energy_kernel(decb_ref, h_ref, we_ref, v_ref, out_ref, *,
                            compute_dtype):
    # decb_ref : (TS*B, A) f32   x @ W_dec + b, rows repeat with period B (resident)
    # h_ref    : (TS*B, C) native-dtype encoder tile (time-major, batch-minor)
    # we_ref   : (C, A)    compute dtype (resident)
    # v_ref    : (1, A)    f32, already scale-normalized (resident)
    # out_ref  : (1, 1, TS*B) f32 lane-dense energy row for this time tile
    h = h_ref[...]
    if h.dtype != compute_dtype:
        # In-kernel cast (VPU work hidden under the MXU): source_hids is read
        # from HBM exactly once at its native width, no wrapper cast pass.
        h = h.astype(compute_dtype)
    enc = jnp.dot(h, we_ref[...], preferred_element_type=jnp.float32)   # MXU
    # TODO(synk): on v6e/v7x with small A the EUP tanh binds; a bf16 tanh path
    # (keeping the v-dot accumulation in f32) would roughly double it.
    act = jnp.tanh(enc + decb_ref[...])                                 # VPU + EUP, f32
    # v-reduction as (1, A) x (TS*B, A)^T: result is a lane-dense (1, TS*B)
    # row, so the output block is written with dense vector stores.
    e_row = jax.lax.dot_general(
        v_ref[...], act,
        dimension_numbers=(((1,), (1,)), ((), ())),
        preferred_element_type=jnp.float32)                             # (1, TS*B)
    out_ref[...] = e_row[None]                                          # (1, 1, TS*B)


def _vmem_budget():
    """Generation-aware VMEM budgeting (v5e/v6e: 128 MiB, v7x: 64 MiB)."""
    try:
        cap = int(pltpu.get_tpu_info().vmem_capacity_bytes)
    except Exception:
        cap = 64 * 1024 * 1024          # conservative fallback (v7x-sized)
    limit = int(min(cap * 3 // 4, 112 * 1024 * 1024))
    return limit, int(limit * 0.85)


def _select_time_tile(S, B, C, A, in_itemsize, c_itemsize, budget_bytes):
    """Largest legal time tile whose full working set fits the VMEM budget."""

    def working_set(ts):
        n = ts * B
        return (2 * n * C * in_itemsize      # double-buffered source_hids tiles
                + n * C * c_itemsize         # in-kernel compute-dtype copy
                + 3 * n * A * 4              # enc / act / reduce intermediates (f32)
                + 2 * n * A * 4              # decb tile (double-buffered input)
                + 2 * C * A * c_itemsize     # W_enc (double-buffered input)
                + 4 * n * 4                  # output rows
                + (2 << 20))                 # v, slack for compiler scratch

    # Second-minor block dim (ts*B) must be a multiple of 8 unless it spans
    # the whole array (ts == S).
    candidates = [t for t in range(1, S + 1) if (t * B) % 8 == 0]
    if S not in candidates:
        candidates.append(S)
    fitting = [t for t in candidates if working_set(t) <= budget_bytes]
    if not fitting:
        return min(candidates)               # best effort: smallest legal tile
    # Prefer >= 4 grid steps so v7x megacore keeps both cores busy and the
    # h-tile DMA double-buffers; fall back to fewer steps for short sources.
    preferred = [t for t in fitting if pl.cdiv(S, t) >= 4] or fitting
    return max(preferred)


def init_energy_params(key, input_dim, context_dim, attention_dim=None,
                       scale=False, init_bias=0.0):
    if attention_dim is None:
        attention_dim = input_dim
    k1, k2, k3 = jax.random.split(key, 3)
    params = {
        "wd": (jax.random.normal(k1, (input_dim, attention_dim), jnp.float32)
               / np.sqrt(input_dim)),
        "we": (jax.random.normal(k2, (context_dim, attention_dim), jnp.float32)
               / np.sqrt(context_dim)),
        "b": jnp.zeros((attention_dim,), jnp.float32),
        "v": (jax.random.normal(k3, (attention_dim,), jnp.float32)
              / np.sqrt(attention_dim)),
        "r": jnp.asarray(init_bias, jnp.float32),
        "g": (jnp.asarray(np.sqrt(1.0 / attention_dim), jnp.float32)
              if scale else None),
    }
    return params


def energy_layer_forward(x, source_hids, encoder_padding_mask, params,
                         exponential=False, compute_dtype=jnp.bfloat16,
                         ts=None):
    """Forward pass of EnergyLayer (additive energy).  Returns (S, B) float32."""
    S, B, C = source_hids.shape
    B2, I = x.shape
    assert B2 == B
    A = params["wd"].shape[1]

    # --- tiny parameter glue in plain JAX -----------------------------------
    v = params["v"].astype(jnp.float32)
    if params.get("g", None) is not None:
        v = params["g"].astype(jnp.float32) * v / jnp.sqrt(jnp.sum(v * v))
    v2 = v.reshape(1, A)

    # Decoder projection + bias once (independent of S), kept in f32.
    decb = (x.astype(jnp.float32) @ params["wd"].astype(jnp.float32)
            + params["b"].astype(jnp.float32)[None, :])                 # (B, A)

    in_itemsize = jnp.dtype(source_hids.dtype).itemsize
    c_itemsize = jnp.dtype(compute_dtype).itemsize
    vmem_limit, budget = _vmem_budget()

    # --- choose the time tile TS --------------------------------------------
    if ts is None:
        ts = _select_time_tile(S, B, C, A, in_itemsize, c_itemsize, budget)
    else:
        ts = int(max(1, min(ts, S)))
        if ts != S and (ts * B) % 8 != 0:
            valid = [t for t in range(ts, 0, -1) if (t * B) % 8 == 0]
            ts = valid[0] if valid else S
    n_rows = ts * B
    num_tiles = pl.cdiv(S, ts)

    # --- operands -------------------------------------------------------------
    # Free (contiguous) flat view; NO dtype cast here -> single HBM pass.
    h_flat = source_hids.reshape(S * B, C)
    we = params["we"].astype(compute_dtype)
    # Rows of decb_tiled repeat with period B, matching the (s, b) b-minor
    # flattening of source_hids.  Only a single (TS*B, A) tile exists
    # (constant index_map), so it is DMA'd once per core, not once per step.
    # TODO(synk): shrink this to (B, A) once a cheap in-kernel period-B
    # sublane broadcast exists; an MXU one-hot broadcast costs a full K pass
    # per step, which is worse.
    decb_tiled = jnp.tile(decb, (ts, 1))                                # (TS*B, A) f32

    kernel = functools.partial(_additive_energy_kernel,
                               compute_dtype=jnp.dtype(compute_dtype))

    flops = 2 * S * B * C * A + 3 * S * B * A
    transcendentals = S * B * A
    bytes_accessed = (S * B * C * in_itemsize        # source_hids (single pass)
                      + n_rows * A * 4               # decb tile
                      + C * A * c_itemsize + A * 4   # W_enc, v
                      + num_tiles * n_rows * 4)      # output

    raw = pl.pallas_call(
        kernel,
        grid=(num_tiles,),
        in_specs=[
            pl.BlockSpec((n_rows, A), lambda i: (0, 0)),   # decb tile (resident)
            pl.BlockSpec((n_rows, C), lambda i: (i, 0)),   # h time tile (pipelined)
            pl.BlockSpec((C, A), lambda i: (0, 0)),        # W_enc (resident)
            pl.BlockSpec((1, A), lambda i: (0, 0)),        # v_hat (resident)
        ],
        out_specs=pl.BlockSpec((1, 1, n_rows), lambda i: (i, 0, 0)),
        out_shape=jax.ShapeDtypeStruct((num_tiles, 1, n_rows), jnp.float32),
        compiler_params=pltpu.CompilerParams(
            dimension_semantics=("parallel",),
            vmem_limit_bytes=vmem_limit),
        cost_estimate=pl.CostEstimate(
            flops=flops, transcendentals=transcendentals,
            bytes_accessed=bytes_accessed),
    )(decb_tiled, h_flat, we, v2)

    # Rows past S*B in a partial last tile are Pallas edge padding; the slice
    # drops them.  Mask / +r / exp act on the tiny (S, B) result here (cheaper
    # than lane-1 mask loads inside the kernel).
    e = raw.reshape(num_tiles * n_rows)[: S * B].reshape(S, B)
    e = e + params["r"].astype(jnp.float32)
    e = jnp.where(encoder_padding_mask.astype(bool), -jnp.inf, e)
    if exponential:
        e = jnp.exp(e)
    return e


def _reference_forward(x, source_hids, encoder_padding_mask, params,
                       exponential=False, compute_dtype=jnp.float32):
    """Pure-JAX reference mirroring the PyTorch semantics (same compute dtype)."""
    v = params["v"].astype(jnp.float32)
    if params.get("g", None) is not None:
        v = params["g"].astype(jnp.float32) * v / jnp.sqrt(jnp.sum(v * v))
    dec = (x.astype(jnp.float32) @ params["wd"].astype(jnp.float32)
           + params["b"].astype(jnp.float32)[None, :])                  # (B, A)
    enc = jnp.einsum("sbc,ca->sba",
                     source_hids.astype(compute_dtype),
                     params["we"].astype(compute_dtype),
                     preferred_element_type=jnp.float32)
    act = jnp.tanh(enc + dec[None, :, :])
    e = jnp.sum(act * v[None, None, :], axis=-1) + params["r"]
    e = jnp.where(encoder_padding_mask.astype(bool), -jnp.inf, e)
    if exponential:
        e = jnp.exp(e)
    return e.astype(jnp.float32)


if __name__ == "__main__":
    key = jax.random.PRNGKey(0)

    # (S, B, input_dim, context_dim, attention_dim, scale, explicit ts)
    configs = [
        (8, 2, 32, 32, 32, True, None),     # auto tile (single full-extent tile)
        (7, 2, 24, 40, 48, False, 4),       # multi-tile with a partial last tile
        (16, 3, 16, 33, None, True, 8),     # B not dividing 8, odd context dim
    ]

    ok = True
    for cfg_idx, (S, B, I, C, A, scale, ts) in enumerate(configs):
        key, kx, kh, kp, kl = jax.random.split(key, 5)
        x = jax.random.normal(kx, (B, I), jnp.float32)                  # decoder state
        source_hids = jax.random.normal(kh, (S, B, C), jnp.float32)     # encoder states
        lengths = jax.random.randint(kl, (B,), 1, S + 1)
        encoder_padding_mask = jnp.arange(S)[:, None] >= lengths[None, :]  # True = pad
        params = init_energy_params(kp, I, C, A, scale=scale, init_bias=-1.0)

        for compute_dtype, tol in ((jnp.float32, 2e-5), (jnp.bfloat16, 2e-3)):
            for expo in (False, True):
                out = energy_layer_forward(x, source_hids, encoder_padding_mask,
                                           params, exponential=expo,
                                           compute_dtype=compute_dtype, ts=ts)
                out = jax.block_until_ready(out)
                ref = _reference_forward(x, source_hids, encoder_padding_mask,
                                         params, exponential=expo,
                                         compute_dtype=compute_dtype)
                ref = jax.block_until_ready(ref)
                if not np.allclose(np.asarray(out), np.asarray(ref),
                                   rtol=tol, atol=tol, equal_nan=True):
                    ok = False
                    diff = np.abs(np.asarray(out) - np.asarray(ref))
                    print("mismatch cfg=%d dtype=%s exponential=%s max|diff|=%s"
                          % (cfg_idx, jnp.dtype(compute_dtype).name, expo,
                             np.nanmax(diff)))

    if ok:
        print("KERNEL_OK")
</pallas_src>

<mosaic_0001>
module attributes {stable_mosaic.version = 11 : i64} {
  func.func @_additive_energy_kernel(%arg0: i32, %arg1: memref<16x32xf32, #tpu.memory_space<vmem>>, %arg2: memref<16x32xf32, #tpu.memory_space<vmem>>, %arg3: memref<32x32xf32, #tpu.memory_space<vmem>>, %arg4: memref<1x32xf32, #tpu.memory_space<vmem>>, %arg5: memref<1x1x16xf32, #tpu.memory_space<vmem>>) attributes {dimension_semantics = [#tpu.dimension_semantics<parallel>], iteration_bounds = array<i64: 1>, scalar_prefetch = 0 : i64, scratch_operands = 0 : i64, tpu.core_type = #tpu.core_type<tc>, window_params = [{pipeline_mode = #tpu.pipeline_mode<synchronous>, transform_indices = @transform_0, window_bounds = array<i64: 16, 32>}, {transform_indices = @transform_1, window_bounds = array<i64: 16, 32>}, {pipeline_mode = #tpu.pipeline_mode<synchronous>, transform_indices = @transform_2, window_bounds = array<i64: 32, 32>}, {pipeline_mode = #tpu.pipeline_mode<synchronous>, transform_indices = @transform_3, window_bounds = array<i64: 1, 32>}, {transform_indices = @transform_4, window_bounds = array<i64: 1, 1, 16>}]} {
    %c0 = arith.constant 0 : index
    %c0_0 = arith.constant 0 : index
    %0 = vector.load %arg2[%c0, %c0_0] : memref<16x32xf32, #tpu.memory_space<vmem>>, vector<16x32xf32>
    %c0_1 = arith.constant 0 : index
    %c0_2 = arith.constant 0 : index
    %1 = vector.load %arg3[%c0_1, %c0_2] : memref<32x32xf32, #tpu.memory_space<vmem>>, vector<32x32xf32>
    %cst = arith.constant dense<0.000000e+00> : vector<16x32xf32>
    %2 = tpu.matmul %0, %1, %cst {dimension_numbers = #tpu.dot_dimension_numbers<[1], [0], [0], [1], [0, 0, 1, 1], [], []>} : vector<16x32xf32>, vector<32x32xf32>, vector<16x32xf32> -> vector<16x32xf32>
    %c0_3 = arith.constant 0 : index
    %c0_4 = arith.constant 0 : index
    %3 = vector.load %arg1[%c0_3, %c0_4] : memref<16x32xf32, #tpu.memory_space<vmem>>, vector<16x32xf32>
    %4 = arith.addf %2, %3 : vector<16x32xf32>
    %5 = math.tanh %4 : vector<16x32xf32>
    %c0_5 = arith.constant 0 : index
    %c0_6 = arith.constant 0 : index
    %6 = vector.load %arg4[%c0_5, %c0_6] : memref<1x32xf32, #tpu.memory_space<vmem>>, vector<1x32xf32>
    %cst_7 = arith.constant dense<0.000000e+00> : vector<1x16xf32>
    %7 = tpu.matmul %6, %5, %cst_7 {dimension_numbers = #tpu.dot_dimension_numbers<[1], [1], [0], [0], [0, 0, 1, 0], [], []>} : vector<1x32xf32>, vector<16x32xf32>, vector<1x16xf32> -> vector<1x16xf32>
    %8 = vector.shape_cast %7 : vector<1x16xf32> to vector<1x1x16xf32>
    %c0_8 = arith.constant 0 : index
    %c0_9 = arith.constant 0 : index
    %c0_10 = arith.constant 0 : index
    %9 = vector.load %arg5[%c0_8, %c0_9, %c0_10] : memref<1x1x16xf32, #tpu.memory_space<vmem>>, vector<1x1x16xf32>
    tpu.vector_store %arg5[%c0_8, %c0_9, %c0_10], %8 {strides = array<i32>} : memref<1x1x16xf32, #tpu.memory_space<vmem>>, vector<1x1x16xf32>,
    return
  }
  func.func @transform_0(%arg0: i32) -> (i32, i32) {
    %c0_i32 = arith.constant 0 : i32
    %c0_i32_0 = arith.constant 0 : i32
    %c0_i32_1 = arith.constant 0 : i32
    return %c0_i32, %c0_i32_0 : i32, i32
  }
  func.func @transform_1(%arg0: i32) -> (i32, i32) {
    %c0_i32 = arith.constant 0 : i32
    %c0_i32_0 = arith.constant 0 : i32
    return %arg0, %c0_i32 : i32, i32
  }
  func.func @transform_2(%arg0: i32) -> (i32, i32) {
    %c0_i32 = arith.constant 0 : i32
    %c0_i32_0 = arith.constant 0 : i32
    %c0_i32_1 = arith.constant 0 : i32
    return %c0_i32, %c0_i32_0 : i32, i32
  }
  func.func @transform_3(%arg0: i32) -> (i32, i32) {
    %c0_i32 = arith.constant 0 : i32
    %c0_i32_0 = arith.constant 0 : i32
    %c0_i32_1 = arith.constant 0 : i32
    return %c0_i32, %c0_i32_0 : i32, i32
  }
  func.func @transform_4(%arg0: i32) -> (i32, i32, i32) {
    %c0_i32 = arith.constant 0 : i32
    %c0_i32_0 = arith.constant 0 : i32
    %c0_i32_1 = arith.constant 0 : i32
    return %arg0, %c0_i32, %c0_i32_0 : i32, i32, i32
  }
}

</mosaic_0001>

<bundles_post_ra>
// kernel: tpu_custom_call.1
= control target key start
LH: loop header
LB: loop body
LE: loop exit
PB: predicated region body
PF: predicated region fallthrough
CT: control target
= control target key end

     0   :  { %9 = vsyncpa [#allocation3], 0  ;;  %s506_s0 = inlined_call_operand.hbm [shape: f32[16,32], index: 0, kind: input, shape index: {}]   ;;  %s507_s1 = inlined_call_operand.hbm [shape: f32[16,32], index: 1, kind: input, shape index: {}]   ;;  %s508_s2 = inlined_call_operand.hbm [shape: f32[32,32], index: 2, kind: input, shape index: {}]   ;;  %s509_s3 = inlined_call_operand.vmem [shape: f32[1,32], index: 3, kind: input, shape index: {}]   ;;  %s510_s4 = inlined_call_operand.hbm [shape: f32[1,1,16], index: 4, kind: output, shape index: {}]  }
   0x1   :  { %10 = vsyncpa [#allocation6], 0 }
   0x2   :  { %11 = vsyncpa [#allocation4], 0  ;;  %s400_s15 = smov [#allocation5]   ;;  %s401_s17 = smov [#allocation2]  }
   0x3   :  { %s29_s16 = sshll.u32 %s400_s15, 4  ;;  %s17_s18 = sshll.u32 %s401_s17, 4  ;;  %s30_s16 = int_to_ptr.vmem [resolvable:$true] %s29_s16  ;;  %s434_s18 = int_to_ptr.vmem [resolvable:$true] %s17_s18 }
   0x4   :  { %s306_s21 = scalar_lea.hbm %s507_s1, 256 }
   0x5   :  { %p307_p0 = scmp.ne.s32.totalorder %s507_s1, %s306_s21  ;;  %p310_p1 = scmp.lt.u32.totalorder %s306_s21, %s507_s1 }
   0x7   :  { %p312_p2 = pnand %p310_p1, %p307_p0 }
   0x9   :  { %315 = shalt.err (!%p312_p2)
}
   0xa   :  { %s316_s26 = scalar_lea.vmem %s30_s16, 256  ;;  %p321_p4 = scmp.lt.s32.totalorder %s30_s16, %s30_s16 }
   0xb   :  { %p317_p3 = scmp.ne.s32.totalorder %s30_s16, %s316_s26  ;;  %p322_p5 = scmp.lt.s32.totalorder %s316_s26, %s316_s26 }
   0xd   :  { %p323_p6 = por %p322_p5, %p321_p4 }
   0xf   :  { %p324_p7 = pnand %p323_p6, %p317_p3 }
  0x11   :  { %327 = shalt.err (!%p324_p7)
}
  0x12   :  { %s402_s27 = smov 128   ;;  %s403_s28 = smov 8  }
  0x13   :  { %35 = dma.hbm_to_vmem [thread:$0]  %s507_s1, 256, %s30_s16, [#allocation6], %s402_s27, %s402_s27, %s403_s28  }
  0x14   :  { %s328_s7 = scalar_lea.hbm %s506_s0, 256 }
  0x15   :  { %p329_p8 = scmp.ne.s32.totalorder %s506_s0, %s328_s7  ;;  %p332_p9 = scmp.lt.u32.totalorder %s328_s7, %s506_s0 }
  0x17   :  { %p334_p10 = pnand %p332_p9, %p329_p8 }
  0x19   :  { %337 = shalt.err (!%p334_p10)
}
  0x1a   :  { %s338_s12 = scalar_lea.vmem %s434_s18, 256  ;;  %p343_p12 = scmp.lt.s32.totalorder %s434_s18, %s434_s18 }
  0x1b   :  { %p339_p11 = scmp.ne.s32.totalorder %s434_s18, %s338_s12  ;;  %p344_p13 = scmp.lt.s32.totalorder %s338_s12, %s338_s12 }
  0x1d   :  { %p345_p0 = por %p344_p13, %p343_p12 }
  0x1f   :  { %p346_p1 = pnand %p345_p0, %p339_p11 }
  0x21   :  { %349 = shalt.err (!%p346_p1)
}
  0x22   :  { %23 = dma.hbm_to_vmem [thread:$0]  %s506_s0, 256, %s434_s18, [#allocation3], %s402_s27, %s402_s27, %s403_s28  }
  0x23   :  { %s404_s14 = smov [#allocation7]   ;;  %s350_s19 = scalar_lea.hbm %s508_s2, 512 }
  0x24   :  { %s41_s15 = sshll.u32 %s404_s14, 4  ;;  %p351_p2 = scmp.ne.s32.totalorder %s508_s2, %s350_s19  ;;  %s42_s15 = int_to_ptr.vmem [resolvable:$true] %s41_s15 }
  0x25   :  { %p354_p3 = scmp.lt.u32.totalorder %s350_s19, %s508_s2 }
  0x27   :  { %p356_p4 = pnand %p354_p3, %p351_p2 }
  0x29   :  { %359 = shalt.err (!%p356_p4)
}
  0x2a   :  { %s360_s24 = scalar_lea.vmem %s42_s15, 512  ;;  %p365_p6 = scmp.lt.s32.totalorder %s42_s15, %s42_s15 }
  0x2b   :  { %p361_p5 = scmp.ne.s32.totalorder %s42_s15, %s360_s24  ;;  %p366_p7 = scmp.lt.s32.totalorder %s360_s24, %s360_s24 }
  0x2d   :  { %p367_p8 = por %p366_p7, %p365_p6 }
  0x2f   :  { %p368_p9 = pnand %p367_p8, %p361_p5 }
  0x31   :  { %371 = shalt.err (!%p368_p9)
}
  0x32   :  { %47 = dma.hbm_to_vmem [thread:$0]  %s508_s2, 512, %s42_s15, [#allocation6], %s402_s27, %s402_s27, %s403_s28  }
  0x33   :  { %394 = dma.done.wait [#allocation3], 256  }
  0x34   :  { %395 = vsyncadd [#allocation3], 4294967040 }
  0x35   :  { %396 = dma.done.wait [#allocation6], 768  }
  0x36   :  { %397 = vsyncadd [#allocation6], 4294966528  ;;  %vm67_vm0 = vcmask 261120   ;;  %v61_v0 = vld [vmem:[#allocation7] sm:$0xff]  ;;  %v62_v1 = vld [vmem:[#allocation7 + $0x8] sm:$0xff]  ;;  %v405_v8 = vmov 0.0|0.0  }
  0x37   :  { %v63_v2 = vld [vmem:[#allocation7 + $0x10] sm:$0xff]  ;;  %v281_v3 = vpack.c.bf16 %v62_v1, %v61_v0  ;;  %v64_v4 = vld [vmem:[#allocation7 + $0x18] sm:$0xff]  ;;  %289 = vmatprep.subr.bf16.mxu1 %v405_v8  ;;  %vm406_vm1 = vmmov 0   ;;  %v407_v9 = vmov 0.0   ;;  %v66_v10 = vld [vmem:[#allocation2 + $0x8] sm:$0xff]  ;;  %s408_s26 = smov [#allocation8]  }
  0x38   :  { %v59_v5 = vld [vmem:[#allocation5] sm:$0xff]  ;;  %v285_v6 = vpack.c.bf16 %v64_v4, %v63_v2  ;;  %v60_v7 = vld [vmem:[#allocation5 + $0x8] sm:$0xff]  ;;  %278 = vmatprep.mubr.msk.f32.mxu1 %vm406_vm1, %v407_v9  ;;  %v65_v11 = vld [vmem:[#allocation2] sm:$0xff]  ;;  %s239_s27 = sshll.u32 %s408_s26, 4  ;;  %vm231_vm3 = vcmask 122880   ;;  %s240_s27 = int_to_ptr.vmem [resolvable:$true] %s239_s27 }
  0x39   :  { %271 = vmatprep.mubr.msk.f32.mxu0 %vm67_vm0, %v59_v5  ;;  %282 = vmatprep.subr.bf16.mxu0 %v281_v3  ;;  %vm291_vm2 = vmpackc.low %vm67_vm0, %vm67_vm0  ;;  %v151_v19 = vld [vmem:[%s509_s3] sm:$0x1]  ;;  %s372_s28 = scalar_lea.vmem %s240_s27, 16  ;;  %s376_s29 = scalar_lea.vmem %s240_s27, 32 }
  0x3a   :  { %284 = vmatpush3.bf16.msra.mxu0 %v281_v3  ;;  %p373_p10 = scmp.ne.s32.totalorder %s240_s27, %s372_s28  ;;  %p377_p11 = scmp.lt.s32.totalorder %s240_s27, %s240_s27 }
  0x3b   :  { %286 = vmatprep.subr.bf16.mxu0 %v285_v6  ;;  %p378_p12 = scmp.lt.s32.totalorder %s376_s29, %s372_s28 }
  0x3d   :  { %p379_p13 = por %p378_p12, %p377_p11 }
  0x3e   :  { %288 = vmatpush3.bf16.msra.mxu0 %v285_v6 }
  0x3f   :  { %p380_p0 = pnand %p379_p13, %p373_p10 }
  0x41   :  { %272 = vmatmul.mubr.msk.f32.vlgmr.msra.gmra.mrb[0].mxu0 %vm67_vm0, %v60_v7 }
 0x114   :  { %v273_v12 = vpop.f32.mrb[0].mxu0 }
 0x115   :  { %v146_v13 = vadd.f32 %v273_v12, %v66_v10  ;;  %v140_v14 = vpop.f32.mrb[1].mxu0 }
 0x116   :  { %v141_v15 = vadd.f32 %v140_v14, %v65_v11 }
 0x117   :  { %302 = vtanh.f32 %v146_v13 }
 0x118   :  { %304 = vtanh.f32 %v141_v15 }
 0x121   :  { %v303_v16 = vpop.eup %302 }
 0x122   :  { %v305_v17 = vpop.eup %304 }
 0x123   :  { %v290_v18 = vpack.c.bf16 %v303_v16, %v305_v17 }
 0x125   :  { %292 = vmatpush3.bf16.xpose.msk.msra.mxu1 %vm291_vm2, %v290_v18 }
 0x12c   :  { %279 = vmatmul.mubr.msk.f32.vlgmr.msra.gmra.mrb[0].mxu1 %vm67_vm0, %v151_v19 }
 0x1ff   :  { %v227_v20 = vpop.f32.mrb[0].mxu1 }
 0x200   :  { %v280_v21 = vpop.f32.mrb[1].mxu1  ;;  %232 = vst.msk [vmem:[#allocation8] sm:$0x1] %vm231_vm3, %v227_v20 }
 0x201   :  { %383 = shalt.err (!%p380_p0)
}
 0x202   :  { %s384_s3 = scalar_lea.hbm %s510_s4, 16 }
 0x203   :  { %p385_p1 = scmp.ne.s32.totalorder %s510_s4, %s384_s3  ;;  %p388_p2 = scmp.lt.u32.totalorder %s384_s3, %s510_s4 }
 0x205   :  { %p390_p3 = pnand %p388_p2, %p385_p1 }
 0x207   :  { %393 = shalt.err (!%p390_p3)
}
 0x208   :  { %242 = dma.vmem_to_hbm [thread:$0]  %s240_s27, 16, %s510_s4, [#allocation4]  }
 0x209   :  { %398 = dma.done.wait [#allocation4], 16  }
 0x20a   :  { %399 = vsyncadd [#allocation4], 4294967280 }
 0x20b   :  { %246 = vsyncpa [#allocation3], 1 }
 0x20c   :  { %247 = vsyncpa [#allocation6], 1 }
 0x20d   :  { %248 = vsyncpa [#allocation4], 1 }

</bundles_post_ra>
